<compile_context>
chip_gen: v5e
topology: v5e:2x2
jax: 0.10.0
libtpu: 0.0.40
codegen_flags: <defaults>
</compile_context>

<pallas_src>
import math
from functools import partial

import jax
import jax.numpy as jnp
from jax.experimental import pallas as pl
from jax.experimental.pallas import tpu as pltpu


# ----------------------------------------------------------------------------
# Shared FFN math: tanh(Linear) -> folded BatchNorm1d(eval) -> tanh(Linear)
#                  -> Linear
# ----------------------------------------------------------------------------
def _ffn_compute(x, w1t, b1, bn_scale, bn_shift, w2t, b2, w3t, b3):
    h = jnp.tanh(jnp.dot(x, w1t, preferred_element_type=jnp.float32) + b1)
    h = h * bn_scale + bn_shift            # BatchNorm1d(eval) folded to FMA
    h = jnp.tanh(jnp.dot(h, w2t, preferred_element_type=jnp.float32) + b2)
    return jnp.dot(h, w3t, preferred_element_type=jnp.float32) + b3


def _read_ffn_params(pp_ref, E, H):
    """Static slices of the packed parameter buffer (FFN portion)."""
    r_w1 = 0
    r_w2 = r_w1 + E
    r_w3 = r_w2 + H
    r_b = 4 * E + 2 * H                    # first bias row
    w1t = pp_ref[r_w1:r_w1 + E, :H]
    w2t = pp_ref[r_w2:r_w2 + H, :H]
    w3t = pp_ref[r_w3:r_w3 + H, :E]
    b1 = pp_ref[r_b + 0:r_b + 1, :H]
    sc = pp_ref[r_b + 1:r_b + 2, :H]
    sh = pp_ref[r_b + 2:r_b + 3, :H]
    b2 = pp_ref[r_b + 3:r_b + 4, :H]
    b3 = pp_ref[r_b + 4:r_b + 5, :E]
    return w1t, b1, sc, sh, w2t, b2, w3t, b3


# ----------------------------------------------------------------------------
# Kernels
# ----------------------------------------------------------------------------
def ffn_kernel(hidden_dim, x_ref, pp_ref, o_ref):
    _, E = x_ref.shape
    o_ref[...] = _ffn_compute(x_ref[...], *_read_ffn_params(pp_ref, E, hidden_dim))


def fused_kernel(num_heads, n_neighbors, hidden_dim,
                 x_ref, nbr_ref, pp_ref, o_ref):
    TB, E = x_ref.shape
    H = hidden_dim
    N = n_neighbors
    hd = E // num_heads
    scale = 1.0 / math.sqrt(hd)

    # ---- FFN embeddings for this batch tile ---------------------------------
    emb = _ffn_compute(x_ref[...], *_read_ffn_params(pp_ref, E, H))      # [TB,E]

    # ---- attention parameters (static slices of the pack) -------------------
    r_wq = E + 2 * H
    r_wkv = r_wq + E
    r_wo = r_wkv + E
    r_b = r_wo + E
    wqt = pp_ref[r_wq:r_wq + E, :E]
    wkvt = pp_ref[r_wkv:r_wkv + E, :2 * E]
    wot = pp_ref[r_wo:r_wo + E, :E]
    bq = pp_ref[r_b + 5:r_b + 6, :E]
    bkv = pp_ref[r_b + 6:r_b + 7, :2 * E]
    bo = pp_ref[r_b + 7:r_b + 8, :E]

    # ---- projections: Q from embeddings, fused K|V from neighbors -----------
    q = jnp.dot(emb, wqt, preferred_element_type=jnp.float32) + bq       # [TB,E]
    kv = jnp.dot(nbr_ref[...], wkvt,
                 preferred_element_type=jnp.float32) + bkv               # [TB*N,2E]
    k = kv[:, :E]                                                        # [TB*N,E]
    v = kv[:, E:]                                                        # [TB*N,E]

    # ---- q broadcast over neighbors (VPU sublane broadcast, no rep matmul) --
    q_rep = jnp.broadcast_to(q[:, None, :], (TB, N, E)).reshape(TB * N, E)

    # ---- block-diagonal head selector, synthesized in-kernel ----------------
    # scores[:, e] carries head(e)'s score replicated across its hd lanes,
    # so the softmax and the p*v product stay lane-dense (width E).
    row = jax.lax.broadcasted_iota(jnp.int32, (E, E), 0)
    col = jax.lax.broadcasted_iota(jnp.int32, (E, E), 1)
    head_sel = (row // hd == col // hd).astype(jnp.float32)              # [E,E]

    s = jnp.dot(q_rep * k, head_sel,
                preferred_element_type=jnp.float32) * scale              # [TB*N,E]
    s3 = s.reshape(TB, N, E)

    # ---- softmax over the N neighbors (sublane-axis reduce, per head) -------
    m = jnp.max(s3, axis=1, keepdims=True)
    p = jnp.exp(s3 - m)
    denom = jnp.sum(p, axis=1, keepdims=True)
    p = p * pl.reciprocal(denom, approx=False)                           # [TB,N,E]

    # ---- weighted V sum (axis-1 XLU reduce, no repT matmul) + out-proj ------
    ctx = jnp.sum(p * v.reshape(TB, N, E), axis=1)                       # [TB,E]
    o_ref[...] = jnp.dot(ctx, wot, preferred_element_type=jnp.float32) + bo


# ----------------------------------------------------------------------------
# Host-side parameter packing: one lane-dense buffer for all weights + biases
#   rows [0,E)         w1.T      width H
#   rows [E,E+H)       w2.T      width H
#   rows [E+H,E+2H)    w3.T      width E
#   rows [E+2H,2E+2H)  wq.T      width E
#   rows [2E+2H,3E+2H) [wk|wv].T width 2E
#   rows [3E+2H,4E+2H) wo.T      width E
#   rows [4E+2H, +8)   b1, bn_scale, bn_shift, b2, b3, bq, bkv, bo
# ----------------------------------------------------------------------------
def _pack_params(params, emb_dim, hidden_dim):
    E, H = emb_dim, hidden_dim
    W = max(H, 2 * E)

    def pad_cols(a):
        return jnp.pad(a, ((0, 0), (0, W - a.shape[1])))

    bn_scale = params["bn_gamma"] / jnp.sqrt(params["bn_var"] + 1e-5)
    bn_shift = params["bn_beta"] - params["bn_mean"] * bn_scale
    wkvt = jnp.concatenate([params["wk"].T, params["wv"].T], axis=1)     # [E,2E]
    bkv = jnp.concatenate([params["bk"], params["bv"]])                  # [2E]

    weight_rows = [params["w1"].T, params["w2"].T, params["w3"].T,
                   params["wq"].T, wkvt, params["wo"].T]
    bias_rows = [params["b1"], bn_scale, bn_shift, params["b2"],
                 params["b3"], params["bq"], bkv, params["bo"]]

    rows = ([pad_cols(w) for w in weight_rows] +
            [pad_cols(b.reshape(1, -1)) for b in bias_rows])
    return jnp.concatenate(rows, axis=0)                                 # [4E+2H+8, W]


def _pick_batch_tile(B):
    # Largest convenient batch tile; per-step footprint even at TB=256
    # (catalog + N*neighbors + 2E-wide KV + output, double-buffered) stays
    # well under v7x's 64 MiB physical / 32 MiB default-scoped VMEM.
    for cand in (256, 128, 64, 32, 16, 8):
        if B % cand == 0:
            return cand
    return B   # tiny / odd batch: single full-array block (grid of 1)


# ----------------------------------------------------------------------------
# pallas_call wrappers
# ----------------------------------------------------------------------------
@jax.jit
def _forward_ffn_only(params, catalog):
    B, E = catalog.shape
    H = params["w1"].shape[0]
    packed = _pack_params(params, E, H)
    TB = _pick_batch_tile(B)
    return pl.pallas_call(
        partial(ffn_kernel, H),
        out_shape=jax.ShapeDtypeStruct((B, E), jnp.float32),
        grid=(B // TB,),
        in_specs=[pl.BlockSpec((TB, E), lambda i: (i, 0)),
                  pl.BlockSpec(packed.shape, lambda i: (0, 0))],
        out_specs=pl.BlockSpec((TB, E), lambda i: (i, 0)),
        compiler_params=pltpu.CompilerParams(
            dimension_semantics=("parallel",)),
    )(catalog, packed)


@partial(jax.jit, static_argnames=("num_heads",))
def _forward_fused(params, catalog, neighbors, *, num_heads):
    B, E = catalog.shape
    H = params["w1"].shape[0]
    N = neighbors.shape[1]
    packed = _pack_params(params, E, H)
    TB = _pick_batch_tile(B)
    nbr_flat = neighbors.reshape(B * N, E)
    return pl.pallas_call(
        partial(fused_kernel, num_heads, N, H),
        out_shape=jax.ShapeDtypeStruct((B, E), jnp.float32),
        grid=(B // TB,),
        in_specs=[pl.BlockSpec((TB, E), lambda i: (i, 0)),
                  pl.BlockSpec((TB * N, E), lambda i: (i, 0)),
                  pl.BlockSpec(packed.shape, lambda i: (0, 0))],
        out_specs=pl.BlockSpec((TB, E), lambda i: (i, 0)),
        compiler_params=pltpu.CompilerParams(
            dimension_semantics=("parallel",)),
    )(catalog, nbr_flat, packed)


def product2vec_forward(params, catalog_features, neighbor_features=None,
                        num_heads=4):
    E = catalog_features.shape[1]
    H = params["w1"].shape[0]
    assert E % num_heads == 0 and E % 8 == 0 and H % 8 == 0
    if neighbor_features is None or neighbor_features.shape[1] == 0:
        return _forward_ffn_only(params, catalog_features)
    return _forward_fused(params, catalog_features, neighbor_features,
                          num_heads=num_heads)


# ----------------------------------------------------------------------------
# Pure-JAX reference (for correctness validation only)
# ----------------------------------------------------------------------------
_HI = jax.lax.Precision.HIGHEST


def product2vec_reference(params, catalog, neighbors=None, num_heads=4):
    bn_scale = params["bn_gamma"] / jnp.sqrt(params["bn_var"] + 1e-5)
    bn_shift = params["bn_beta"] - params["bn_mean"] * bn_scale
    h = jnp.tanh(jnp.dot(catalog, params["w1"].T, precision=_HI) + params["b1"])
    h = h * bn_scale + bn_shift
    h = jnp.tanh(jnp.dot(h, params["w2"].T, precision=_HI) + params["b2"])
    emb = jnp.dot(h, params["w3"].T, precision=_HI) + params["b3"]
    if neighbors is None:
        return emb
    B, N, E = neighbors.shape
    hd = E // num_heads
    q = jnp.dot(emb, params["wq"].T, precision=_HI) + params["bq"]
    k = jnp.dot(neighbors, params["wk"].T, precision=_HI) + params["bk"]
    v = jnp.dot(neighbors, params["wv"].T, precision=_HI) + params["bv"]
    qh = q.reshape(B, num_heads, hd)
    kh = k.reshape(B, N, num_heads, hd)
    vh = v.reshape(B, N, num_heads, hd)
    s = jnp.einsum("bhd,bnhd->bhn", qh, kh, precision=_HI) / math.sqrt(hd)
    p = jax.nn.softmax(s, axis=-1)
    ctx = jnp.einsum("bhn,bnhd->bhd", p, vh, precision=_HI).reshape(B, E)
    return jnp.dot(ctx, params["wo"].T, precision=_HI) + params["bo"]


# ----------------------------------------------------------------------------
# Parameter init (deterministic, PyTorch-Linear-style uniform)
# ----------------------------------------------------------------------------
def init_params(key, emb_dim, hidden_dim):
    ks = jax.random.split(key, 14)

    def lin(k, fan_in, shape):
        bound = 1.0 / math.sqrt(fan_in)
        return jax.random.uniform(k, shape, jnp.float32, -bound, bound)

    return {
        # FeedForwardNetwork
        "w1": lin(ks[0], emb_dim, (hidden_dim, emb_dim)),
        "b1": lin(ks[1], emb_dim, (hidden_dim,)),
        "bn_gamma": jnp.ones((hidden_dim,), jnp.float32),
        "bn_beta": jnp.zeros((hidden_dim,), jnp.float32),
        "bn_mean": jnp.zeros((hidden_dim,), jnp.float32),
        "bn_var": jnp.ones((hidden_dim,), jnp.float32),
        "w2": lin(ks[2], hidden_dim, (hidden_dim, hidden_dim)),
        "b2": lin(ks[3], hidden_dim, (hidden_dim,)),
        "w3": lin(ks[4], hidden_dim, (emb_dim, hidden_dim)),
        "b3": lin(ks[5], hidden_dim, (emb_dim,)),
        # MultiheadAttention (in_proj split into q/k/v)
        "wq": lin(ks[6], emb_dim, (emb_dim, emb_dim)),
        "wk": lin(ks[7], emb_dim, (emb_dim, emb_dim)),
        "wv": lin(ks[8], emb_dim, (emb_dim, emb_dim)),
        "bq": lin(ks[9], emb_dim, (emb_dim,)),
        "bk": lin(ks[10], emb_dim, (emb_dim,)),
        "bv": lin(ks[11], emb_dim, (emb_dim,)),
        "wo": lin(ks[12], emb_dim, (emb_dim, emb_dim)),
        "bo": lin(ks[13], emb_dim, (emb_dim,)),
    }


if __name__ == "__main__":
    # config: PRODUCT_EMB_DIM=32, HIDDEN_SIZE=64, NUM_ATTENTION_HEADS=4, DROPOUT=0.1
    EMB_DIM, HIDDEN, NUM_HEADS = 32, 64, 4
    B, N_NEIGHBORS = 24, 8          # B=24 -> batch tile 8, grid of 3 steps

    key = jax.random.PRNGKey(0)
    k_par, k_cat, k_nei = jax.random.split(key, 3)

    params = init_params(k_par, EMB_DIM, HIDDEN)
    catalog = jax.random.normal(k_cat, (B, EMB_DIM), jnp.float32)
    neighbors = jax.random.normal(k_nei, (B, N_NEIGHBORS, EMB_DIM), jnp.float32)

    # path without neighbors (FFN only)
    emb_only = product2vec_forward(params, catalog, None, NUM_HEADS)
    # full path (FFN + per-example attention over neighbors), single fused kernel
    out = product2vec_forward(params, catalog, neighbors, NUM_HEADS)

    jax.block_until_ready(emb_only)
    jax.block_until_ready(out)

    assert emb_only.shape == (B, EMB_DIM)
    assert out.shape == (B, EMB_DIM) and out.dtype == jnp.float32
    assert bool(jnp.all(jnp.isfinite(out)))

    # validate against pure-JAX reference
    ref_emb = product2vec_reference(params, catalog, None, NUM_HEADS)
    ref_out = product2vec_reference(params, catalog, neighbors, NUM_HEADS)
    assert bool(jnp.allclose(emb_only, ref_emb, atol=2e-2, rtol=2e-2))
    assert bool(jnp.allclose(out, ref_out, atol=2e-2, rtol=2e-2))

    print("KERNEL_OK")
</pallas_src>

<mosaic_0001>
module attributes {stable_mosaic.version = 11 : i64} {
  func.func @ffn_kernel(%arg0: i32, %arg1: memref<8x32xf32, #tpu.memory_space<vmem>>, %arg2: memref<264x64xf32, #tpu.memory_space<vmem>>, %arg3: memref<8x32xf32, #tpu.memory_space<vmem>>) attributes {dimension_semantics = [#tpu.dimension_semantics<parallel>], iteration_bounds = array<i64: 3>, scalar_prefetch = 0 : i64, scratch_operands = 0 : i64, tpu.core_type = #tpu.core_type<tc>, window_params = [{transform_indices = @transform_0, window_bounds = array<i64: 8, 32>}, {pipeline_mode = #tpu.pipeline_mode<synchronous>, transform_indices = @transform_1, window_bounds = array<i64: 264, 64>}, {transform_indices = @transform_2, window_bounds = array<i64: 8, 32>}]} {
    %c0 = arith.constant 0 : index
    %c0_0 = arith.constant 0 : index
    %0 = vector.load %arg1[%c0, %c0_0] : memref<8x32xf32, #tpu.memory_space<vmem>>, vector<8x32xf32>
    %c0_1 = arith.constant 0 : index
    %c0_2 = arith.constant 0 : index
    %1 = vector.load %arg2[%c0_1, %c0_2] : memref<264x64xf32, #tpu.memory_space<vmem>>, vector<32x64xf32>
    %c32 = arith.constant 32 : index
    %c0_3 = arith.constant 0 : index
    %2 = vector.load %arg2[%c32, %c0_3] : memref<264x64xf32, #tpu.memory_space<vmem>>, vector<64x64xf32>
    %c96 = arith.constant 96 : index
    %c0_4 = arith.constant 0 : index
    %3 = vector.load %arg2[%c96, %c0_4] : memref<264x64xf32, #tpu.memory_space<vmem>>, vector<64x32xf32>
    %c256 = arith.constant 256 : index
    %c0_5 = arith.constant 0 : index
    %4 = vector.load %arg2[%c256, %c0_5] : memref<264x64xf32, #tpu.memory_space<vmem>>, vector<1x64xf32>
    %c257 = arith.constant 257 : index
    %c0_6 = arith.constant 0 : index
    %5 = vector.load %arg2[%c257, %c0_6] : memref<264x64xf32, #tpu.memory_space<vmem>>, vector<1x64xf32>
    %c258 = arith.constant 258 : index
    %c0_7 = arith.constant 0 : index
    %6 = vector.load %arg2[%c258, %c0_7] : memref<264x64xf32, #tpu.memory_space<vmem>>, vector<1x64xf32>
    %c259 = arith.constant 259 : index
    %c0_8 = arith.constant 0 : index
    %7 = vector.load %arg2[%c259, %c0_8] : memref<264x64xf32, #tpu.memory_space<vmem>>, vector<1x64xf32>
    %c260 = arith.constant 260 : index
    %c0_9 = arith.constant 0 : index
    %8 = vector.load %arg2[%c260, %c0_9] : memref<264x64xf32, #tpu.memory_space<vmem>>, vector<1x32xf32>
    %cst = arith.constant dense<0.000000e+00> : vector<8x64xf32>
    %9 = tpu.matmul %0, %1, %cst {dimension_numbers = #tpu.dot_dimension_numbers<[1], [0], [0], [1], [0, 0, 1, 1], [], []>} : vector<8x32xf32>, vector<32x64xf32>, vector<8x64xf32> -> vector<8x64xf32>
    %10 = vector.broadcast %4 : vector<1x64xf32> to vector<8x64xf32>
    %11 = arith.addf %9, %10 : vector<8x64xf32>
    %12 = math.tanh %11 : vector<8x64xf32>
    %13 = vector.broadcast %5 : vector<1x64xf32> to vector<8x64xf32>
    %14 = arith.mulf %12, %13 : vector<8x64xf32>
    %15 = vector.broadcast %6 : vector<1x64xf32> to vector<8x64xf32>
    %16 = arith.addf %14, %15 : vector<8x64xf32>
    %cst_10 = arith.constant dense<0.000000e+00> : vector<8x64xf32>
    %17 = tpu.matmul %16, %2, %cst_10 {dimension_numbers = #tpu.dot_dimension_numbers<[1], [0], [0], [1], [0, 0, 1, 1], [], []>} : vector<8x64xf32>, vector<64x64xf32>, vector<8x64xf32> -> vector<8x64xf32>
    %18 = vector.broadcast %7 : vector<1x64xf32> to vector<8x64xf32>
    %19 = arith.addf %17, %18 : vector<8x64xf32>
    %20 = math.tanh %19 : vector<8x64xf32>
    %cst_11 = arith.constant dense<0.000000e+00> : vector<8x32xf32>
    %21 = tpu.matmul %20, %3, %cst_11 {dimension_numbers = #tpu.dot_dimension_numbers<[1], [0], [0], [1], [0, 0, 1, 1], [], []>} : vector<8x64xf32>, vector<64x32xf32>, vector<8x32xf32> -> vector<8x32xf32>
    %22 = vector.broadcast %8 : vector<1x32xf32> to vector<8x32xf32>
    %23 = arith.addf %21, %22 : vector<8x32xf32>
    %c0_12 = arith.constant 0 : index
    %c0_13 = arith.constant 0 : index
    %24 = vector.load %arg3[%c0_12, %c0_13] : memref<8x32xf32, #tpu.memory_space<vmem>>, vector<8x32xf32>
    tpu.vector_store %arg3[%c0_12, %c0_13], %23 {strides = array<i32>} : memref<8x32xf32, #tpu.memory_space<vmem>>, vector<8x32xf32>,
    return
  }
  func.func @transform_0(%arg0: i32) -> (i32, i32) {
    %c0_i32 = arith.constant 0 : i32
    %c0_i32_0 = arith.constant 0 : i32
    return %arg0, %c0_i32 : i32, i32
  }
  func.func @transform_1(%arg0: i32) -> (i32, i32) {
    %c0_i32 = arith.constant 0 : i32
    %c0_i32_0 = arith.constant 0 : i32
    %c0_i32_1 = arith.constant 0 : i32
    return %c0_i32, %c0_i32_0 : i32, i32
  }
  func.func @transform_2(%arg0: i32) -> (i32, i32) {
    %c0_i32 = arith.constant 0 : i32
    %c0_i32_0 = arith.constant 0 : i32
    return %arg0, %c0_i32 : i32, i32
  }
}

</mosaic_0001>

<bundles_post_ra>
// kernel: _forward_ffn_only.1
= control target key start
LH: loop header
LB: loop body
LE: loop exit
PB: predicated region body
PF: predicated region fallthrough
CT: control target
= control target key end

     0   :  { %7 = vsyncpa [#allocation3], 0  ;;  %s625_s0 = inlined_call_operand.vmem [shape: f32[24,32], index: 0, kind: input, shape index: {}]   ;;  %s626_s1 = inlined_call_operand.vmem [shape: f32[264,64], index: 1, kind: input, shape index: {}]   ;;  %s627_s2 = inlined_call_operand.hbm [shape: f32[24,32], index: 2, kind: output, shape index: {}]  }
   0x1   :  { %9 = vsyncpa [#allocation3 + $0x1], 0  ;;  %s461_s9 = smov 0   ;;  %s463_s10 = smov 0  }
   0x2   :  { %s465_s11 = smov 0   ;;  %s467_s12 = smov 0  }
   0x3 LB: > { %s482_s13 = sadd.s32 4294967295, %s444_s12   ;;  %s321_s14 = sadd.s32 4294967294, %s444_s12   ;;  %s444_s12 = sphi %s467_s12, %s633_s12   ;;  %s440_s11 = sphi %s465_s11, %s632_s11   ;;  %s436_s10 = sphi %s463_s10, %s631_s10   ;;  %s432_s9 = sphi %s461_s9, %s630_s9  }
   0x4   : > { %s486_s15 = sadd.s32 1, %s444_s12   ;;  %s69_s16 = sadd.s32 1, %s440_s11 }
   0x5   : > { %s66_s17 = ssub.s32 %s444_s12, %s486_s15  ;;  %p79_p0 = scmp.ne.s32.totalorder %s440_s11, %s436_s10 }
   0x6   : > { %p67_p1 = scmp.eq.s32.totalorder %s66_s17, 0  ;;  %p80_p2 = scmp.eq.s32.totalorder %s482_s13, 2 }
   0x7   : > { %p85_p3 = scmp.ne.s32.totalorder %s436_s10, %s432_s9  ;;  %p86_p4 = scmp.eq.s32.totalorder %s321_s14, 2 }
   0x8   : > { %s497_s18 = scalar_select %p67_p1, %s440_s11, %s69_s16  }
   0x9   : > { %p499_p5 = por %p80_p2, %p79_p0  ;;  %p503_p6 = por %p86_p4, %p85_p3 }
   0xa   : > { %p324_p7 = scmp.ge.s32.totalorder %s444_s12, 1  ;;  %p114_p8 = scmp.lt.s32.totalorder %s444_s12, 4 }
   0xc   : > { %p115_p9 = pnand %p324_p7, %p114_p8 }
   0xd   : > { %p135_p10 = scmp.lt.s32.totalorder (!%p115_p9), %s482_s13, 2  ;;  %s132_s8 = sand.u32 (!%p115_p9), 1, %s436_s10  }
   0xe   : > { %118 = sbr.rel (%p115_p9) target bundleno = 438 (0x1b6), region = 28  ;;  %s325_s14 = sshll.u32 (!%p115_p9), %s132_s8, 3 }
   0xf   : > { %s331_s16 = sshll.u32 (!%p115_p9), %s482_s13, 3  ;;  %s134_s25 = scalar_lea.vmem (!%p115_p9), [#allocation2], %s325_s14 }
  0x10   : > { %s257_s22 = scalar_lea.hbm (!%p115_p9), %s627_s2, %s331_s16  ;;  %s259_s26 = sshll.u32 (!%p115_p9), %s134_s25, 4  ;;  %s260_s26 = int_to_ptr.vmem [resolvable:$true] %s259_s26 }
  0x11   : > { %s261_s27 = sshll.u32 (!%p115_p9), %s257_s22, 4  ;;  %s247_s28 = scalar_lea.sflag (!%p115_p9), [#allocation3], %s132_s8  ;;  %s262_s27 = int_to_ptr.hbm [resolvable:$true] %s261_s27 }
  0x13   : > { %v143_v0 = vld [vmem:[%s626_s1 + $0x18] sm:$0xff]  ;;  %v142_v1 = vld [vmem:[%s626_s1 + $0x10] sm:$0xff]  ;;  %v141_v3 = vld [vmem:[%s626_s1 + $0x8] sm:$0xff]  ;;  %s136_s29 = scalar_select %p135_p10, %s482_s13, 2  ;;  %vm166_vm0 = vcmask 261120   ;;  %vm196_vm1 = vcmask 523264  }
  0x14   : > { %182 = vmatpush.msra.mxu0 %v143_v0  ;;  %v151_v2 = vld [vmem:[%s626_s1 + $0x58] sm:$0xff]  ;;  %v140_v4 = vld [vmem:[%s626_s1] sm:$0xff]  ;;  %v150_v6 = vld [vmem:[%s626_s1 + $0x50] sm:$0xff]  ;;  %s396_s13 = sshra.s32 %s262_s27, 4  ;;  %s397_s13 = int_to_ptr.hbm [resolvable:$true] %s396_s13 }
  0x15   : > { %208 = vmatpush.msra.mxu1 %v151_v2  ;;  %s326_s4 = sshll.u32 %s136_s29, 3  ;;  %v149_v7 = vld [vmem:[%s626_s1 + $0x48] sm:$0xff]  ;;  %v148_v8 = vld [vmem:[%s626_s1 + $0x40] sm:$0xff]  ;;  %v147_v9 = vld [vmem:[%s626_s1 + $0x38] sm:$0xff]  ;;  %s398_s29 = scalar_lea.hbm %s397_s13, 8 }
  0x16   : > { %183 = vmatpush.msra.mxu0 %v142_v1  ;;  %s138_s7 = scalar_lea.vmem %s625_s0, %s326_s4  ;;  %v146_v10 = vld [vmem:[%s626_s1 + $0x30] sm:$0xff]  ;;  %v145_v11 = vld [vmem:[%s626_s1 + $0x28] sm:$0xff]  ;;  %v144_v12 = vld [vmem:[%s626_s1 + $0x20] sm:$0xff]  ;;  %p399_p11 = scmp.ne.s32.totalorder %s397_s13, %s398_s29 }
  0x17   : > { %v139_v5 = vld [vmem:[%s138_s7] sm:$0xff]  ;;  %209 = vmatpush.msra.mxu1 %v150_v6  ;;  %v159_v13 = vld [vmem:[%s626_s1 + $0x98] sm:$0xff]  ;;  %v158_v14 = vld [vmem:[%s626_s1 + $0x90] sm:$0xff]  ;;  %s402_s4 = scalar_lea.hbm %s627_s2, 24  ;;  %p403_p0 = scmp.lt.s32.totalorder %s397_s13, %s627_s2 }
  0x18   : > { %184 = vmatpush.msra.mxu0 %v141_v3  ;;  %233 = vmatpush.msra.mxu2 %v159_v13  ;;  %v157_v15 = vld [vmem:[%s626_s1 + $0x88] sm:$0xff]  ;;  %v373_v16 = vld [vmem:[%s626_s1 + $0x100] ss:$0 sm:$0xff]  ;;  %v374_v19 = vld [vmem:[%s626_s1 + $0x101] ss:$0 sm:$0xff]  ;;  %p400_p12 = pnand %p399_p11, %p499_p5  ;;  %p404_p1 = scmp.lt.s32.totalorder %s402_s4, %s398_s29 }
  0x19   : > { %210 = vmatpush.msra.mxu1 %v149_v7  ;;  %v375_v20 = vld [vmem:[%s626_s1 + $0x102] ss:$0 sm:$0xff]  ;;  %v155_v25 = vld [vmem:[%s626_s1 + $0x78] sm:$0xff]  ;;  %v154_v26 = vld [vmem:[%s626_s1 + $0x70] sm:$0xff] }
  0x1a   : > { %185 = vmatpush.msra.mxu0 %v140_v4  ;;  %234 = vmatpush.msra.mxu2 %v158_v14  ;;  %v156_v24 = vld [vmem:[%s626_s1 + $0x80] sm:$0xff]  ;;  %v153_v27 = vld [vmem:[%s626_s1 + $0x68] sm:$0xff]  ;;  %p401_p13 = pneg %p400_p12  ;;  %p405_p2 = por %p404_p1, %p403_p0 }
  0x1b   : > { %327 = vmatmul.msk.f32.vlgmr.msra.gmra.mxu0 %vm166_vm0, %v139_v5  ;;  %211 = vmatpush.msra.mxu1 %v148_v8  ;;  %v152_v28 = vld [vmem:[%s626_s1 + $0x60] sm:$0xff] }
  0x1c   : > { %235 = vmatpush.msra.mxu2 %v157_v15  ;;  %v376_v29 = vld [vmem:[%s626_s1 + $0x103] ss:$0 sm:$0xff]  ;;  %v377_v33 = vld [vmem:[%s626_s1 + $0x104] ss:$0 sm:$0xff]  ;;  %p406_p3 = pnand %p405_p2, %p401_p13 }
  0x1d   : > { %212 = vmatpush.msra.mxu1 %v147_v9 }
  0x1e   : > { %236 = vmatpush.msra.mxu2 %v156_v24 }
  0x1f   : > { %213 = vmatpush.msra.mxu1 %v146_v10 }
  0x20   : > { %237 = vmatpush.msra.mxu2 %v155_v25 }
  0x21   : > { %214 = vmatpush.msra.mxu1 %v145_v11 }
  0x22   : > { %238 = vmatpush.msra.mxu2 %v154_v26 }
  0x23   : > { %215 = vmatpush.msra.mxu1 %v144_v12 }
  0x24   : > { %239 = vmatpush.msra.mxu2 %v153_v27 }
  0x26   : > { %240 = vmatpush.msra.mxu2 %v152_v28 }
  0x98   : > { %v187_v17 = vpop.f32.mrf.mxu0 }
  0x99   : > { %v188_v18 = vadd.f32 %v373_v16, %v187_v17 }
  0x9b   : > { %378 = vtanh.f32 %v188_v18 }
  0xa1   : > { %v379_v21 = vpop.eup %378 }
  0xa2   : > { %v192_v22 = vmul.f32 %v379_v21, %v374_v19 }
  0xa4   : > { %v194_v23 = vadd.f32 %v375_v20, %v192_v22 }
  0xa6   : > { %328 = vmatmul.msk.f32.vlgmr.msra.gmra.mxu1 %vm196_vm1, %v194_v23 }
 0x123   : > { %v217_v30 = vpop.f32.mrf.mxu1 }
 0x124   : > { %v218_v31 = vadd.f32 %v376_v29, %v217_v30 }
 0x126   : > { %380 = vtanh.f32 %v218_v31 }
 0x12c   : > { %v381_v32 = vpop.eup %380 }
 0x12d   : > { %329 = vmatmul.msk.f32.vlgmr.msra.gmra.mxu2 %vm196_vm1, %v381_v32 }
 0x1b0   : > { %v242_v34 = vpop.f32.mrf.mxu2 }
 0x1b1   : > { %v243_v35 = vadd.f32 %v377_v33, %v242_v34 }
 0x1b3   : > { %245 = vst.msk [vmem:[%s134_s25] sm:$0xff] %vm166_vm0, %v243_v35 }
 0x1b4   : > { %409 = shalt.err (!%p406_p3)
}
 0x1b5   : > { %334 = dma.vmem_to_hbm [thread:$0]  (%p499_p5), %s260_s26, 128, %s262_s27, %s247_s28  }
 0x1b6 PF: > { %p340_p4 = scmp.ge.s32.totalorder %s444_s12, 2  ;;  %s273_s7 = sand.u32 1, %s432_s9  }
 0x1b7   : > { %s274_s8 = scalar_lea.sflag [#allocation3], %s273_s7 }
 0x1b8   : > { %p337_p7 = pnand %p340_p4, %p503_p6 }
 0x1ba   : > { %p338_p8 = pneg %p337_p7 }
 0x1bc   : > { %427 = dma.done.wait (%p338_p8), %s274_s8, 128  }
 0x1bd   : > { %429 = vsyncadd (%p338_p8), %s274_s8, 4294967168  ;;  %p12_p9 = scmp.ge.s32.totalorder %s486_s15, 5   ;;  %s630_s9 = smov %s436_s10 }
 0x1be   : > { %s631_s10 = smov %s440_s11  ;;  %s632_s11 = smov %s497_s18 }
 0x1bf   : > { %s633_s12 = smov %s486_s15  ;;  %14 = sbr.rel (!%p12_p9) target bundleno = 3 (0x3), region = 63 }
 0x1c4   :  { %280 = vsyncpa [#allocation3], 1 }
 0x1c5   :  { %282 = vsyncpa [#allocation3 + $0x1], 1 }

</bundles_post_ra>
